<compile_context>
chip_gen: v5e
topology: v5e:2x2
jax: 0.10.0
libtpu: 0.0.40
codegen_flags: <defaults>
</compile_context>

<pallas_src>
import jax
import jax.numpy as jnp
from jax.experimental import pallas as pl
from jax.experimental.pallas import tpu as pltpu

# ----------------------------- config (small, consistent with the module) ----
BATCH = 2
CIN = 4                   # backbone.num_channels
H = W = 16                # backbone feature-map spatial size
HIDDEN = 32               # transformer.d_model
NUM_QUERIES = 8
NUM_OBJ_CLASSES = 7       # obj head out = NUM_OBJ_CLASSES + 1 = 8
NUM_ATTN_CLASSES = 3      # attn head out = NUM_ATTN_CLASSES + 1 = 4
NUM_SPATIAL_CLASSES = 6
NUM_CONTACTING_CLASSES = 17
DSGG_TASK = "sgcls"       # exercises the sub_class head
NO_UPDATE_PAIR = False    # exercises obj_class / sub_bbox / obj_bbox heads

# ---- lane layouts (all within 128-lane result slabs) --------------------------
# HOPD stage-1 slab (rows 0:N of the heads output):
_C_SUBH1 = slice(0, HIDDEN)                       # sub bbox MLP layer-1 acts
_C_OBJH1 = slice(HIDDEN, 2 * HIDDEN)              # obj bbox MLP layer-1 acts
_C_SUBCLS = slice(64, 66)                         # sub logits (2)
_C_OBJCLS = slice(66, 66 + NUM_OBJ_CLASSES + 1)   # obj logits (8)  -> 66:74
# bbox sigmoid slab (rows N:2N):
_C_SUBBOX = slice(0, 4)
_C_OBJBOX = slice(4, 8)
# interaction slab (rows 2N:3N):
_C_ATTN = slice(0, NUM_ATTN_CLASSES + 1)                               # 0:4
_C_SPAT = slice(_C_ATTN.stop, _C_ATTN.stop + NUM_SPATIAL_CLASSES)      # 4:10
_C_CONT = slice(_C_SPAT.stop, _C_SPAT.stop + NUM_CONTACTING_CLASSES)   # 10:27

# ---- packed weight buffer layout (rows of a (PACK_ROWS, 256) f32 buffer) ------
ROW_W1 = 0                       # (HIDDEN, 256): [hopd stage-1 | interaction]
ROW_W2 = ROW_W1 + HIDDEN         # (128, 128) in lanes 0:128 (rows 64:128 zero)
ROW_W3 = ROW_W2 + 128            # (128, 128) in lanes 0:128 (rows 64:128 zero)
ROW_CONV = ROW_W3 + 128          # (HIDDEN, CIN+1): [conv weight | conv bias]
ROW_B1 = ROW_CONV + HIDDEN       # (1, 256) stage-1 + interaction bias
ROW_B2 = ROW_B1 + 1              # (1, 128) stage-2 bias
ROW_B3 = ROW_B2 + 1              # (1, 128) stage-3 bias
PACK_ROWS = ((ROW_B3 + 1 + 7) // 8) * 8
PACK_COLS = 256

# ---- layout hygiene asserts (guard against silent corruption on edits) --------
assert _C_SUBH1.stop == _C_OBJH1.start and _C_OBJH1.stop <= _C_SUBCLS.start
assert _C_SUBCLS.stop == _C_OBJCLS.start and _C_OBJCLS.stop <= 128
assert _C_SUBBOX.stop == _C_OBJBOX.start and _C_OBJBOX.stop <= 128
assert _C_ATTN.stop == _C_SPAT.start and _C_SPAT.stop == _C_CONT.start
assert _C_CONT.stop <= 128
assert ROW_B3 < PACK_ROWS and CIN + 1 <= PACK_COLS and 2 * HIDDEN <= 128


def _sh(s, off):
    """Shift a slice by a lane offset."""
    return slice(s.start + off, s.stop + off)


# ----------------------------- fused kernel -----------------------------------
def _cdndsgg_fused_kernel(src_ref, x2_ref, pack_ref, proj_ref, heads_ref):
    bsz, cin, hw = src_ref.shape
    hid = proj_ref.shape[1]
    n = heads_ref.shape[0] // 3

    # ---- input_proj: 1x1 conv, ONE MXU matmul over all batches ----------------
    cw = pack_ref[ROW_CONV:ROW_CONV + hid, 0:cin]              # (HIDDEN, CIN)
    cb = pack_ref[ROW_CONV:ROW_CONV + hid, cin:cin + 1]        # (HIDDEN, 1)
    # lane-concat the B batch slices -> (CIN, B*HW), one matmul instead of B.
    src_cb = jnp.concatenate([src_ref[b] for b in range(bsz)], axis=1)
    conv = jnp.dot(cw, src_cb, preferred_element_type=jnp.float32) + cb
    for b in range(bsz):              # static unroll; 256-lane unmasked stores
        proj_ref[b, :, :] = conv[:, b * hw:(b + 1) * hw]

    # ---- heads: one stacked stage-1 / interaction GEMM + fused bbox MLP -------
    x2 = x2_ref[...]                                           # (2N, HIDDEN)
    w1 = pack_ref[ROW_W1:ROW_W1 + hid, :]                      # (HIDDEN, 256)
    b1 = pack_ref[ROW_B1:ROW_B1 + 1, :]                        # (1, 256)
    y = jnp.dot(x2, w1, preferred_element_type=jnp.float32) + b1   # (2N, 256)

    yh = y[0:n, 0:128]            # HOPD rows: [sub_h1 | obj_h1 | sub_cls | obj_cls | 0]
    yi = y[n:2 * n, 128:256]      # interaction rows: [attn | spatial | contact | 0]

    # bbox MLPs, block-diagonal fused; W2 rows 64:128 are zero so the relu'd
    # logit lanes of yh contribute nothing (bit-identical to unfused math).
    w2 = pack_ref[ROW_W2:ROW_W2 + 128, 0:128]
    b2 = pack_ref[ROW_B2:ROW_B2 + 1, 0:128]
    h2 = jax.nn.relu(
        jnp.dot(jax.nn.relu(yh), w2, preferred_element_type=jnp.float32) + b2)

    w3 = pack_ref[ROW_W3:ROW_W3 + 128, 0:128]
    b3 = pack_ref[ROW_B3:ROW_B3 + 1, 0:128]
    y3 = jax.nn.sigmoid(
        jnp.dot(h2, w3, preferred_element_type=jnp.float32) + b3)

    # three disjoint 16-row blocks of one lane-dense (3N, 128) slab, no masking.
    heads_ref[0:n, :] = yh
    heads_ref[n:2 * n, :] = y3
    heads_ref[2 * n:3 * n, :] = yi


def cdndsgg_fused(src3, x2, pack):
    bsz, cin, hw = src3.shape
    n2, hid = x2.shape
    n = n2 // 2
    out_shapes = (
        jax.ShapeDtypeStruct((bsz, HIDDEN, hw), jnp.float32),
        jax.ShapeDtypeStruct((3 * n, 128), jnp.float32),
    )
    flops = (2 * HIDDEN * cin * bsz * hw            # conv
             + 2 * n2 * hid * PACK_COLS             # stacked stage-1/interaction
             + 2 * 2 * n * 128 * 128)               # bbox MLP stages 2 & 3
    bytes_accessed = 4 * (src3.size + x2.size + pack.size
                          + bsz * HIDDEN * hw + 3 * n * 128)
    vmem_spec = pl.BlockSpec(memory_space=pltpu.MemorySpace.VMEM)
    return pl.pallas_call(
        _cdndsgg_fused_kernel,
        out_shape=out_shapes,
        in_specs=[vmem_spec, vmem_spec, vmem_spec],
        out_specs=(vmem_spec, vmem_spec),
        cost_estimate=pl.CostEstimate(
            flops=flops, transcendentals=n * 128, bytes_accessed=bytes_accessed),
    )(src3, x2, pack)


# ----------------------------- parameter init --------------------------------
def _init_linear(key, fan_in, fan_out):
    # torch nn.Linear default: U(-1/sqrt(fan_in), 1/sqrt(fan_in)); stored [in, out].
    kw, kb = jax.random.split(key)
    bound = 1.0 / jnp.sqrt(fan_in)
    w = jax.random.uniform(kw, (fan_in, fan_out), jnp.float32, -bound, bound)
    b = jax.random.uniform(kb, (1, fan_out), jnp.float32, -bound, bound)
    return w, b


def init_params(key):
    keys = jax.random.split(key, 16)
    p = {}
    # input_proj 1x1 conv: weight (out, in) = (HIDDEN, CIN), bias (HIDDEN, 1)
    kw, kb = jax.random.split(keys[0])
    bound = 1.0 / jnp.sqrt(CIN)
    p["proj_w"] = jax.random.uniform(kw, (HIDDEN, CIN), jnp.float32, -bound, bound)
    p["proj_b"] = jax.random.uniform(kb, (HIDDEN, 1), jnp.float32, -bound, bound)

    p["sub_cls_w"], p["sub_cls_b"] = _init_linear(keys[1], HIDDEN, 2)   # temporal_sub_class_embed
    p["obj_cls_w"], p["obj_cls_b"] = _init_linear(keys[2], HIDDEN, NUM_OBJ_CLASSES + 1)
    p["sub_box_w1"], p["sub_box_b1"] = _init_linear(keys[3], HIDDEN, HIDDEN)
    p["sub_box_w2"], p["sub_box_b2"] = _init_linear(keys[4], HIDDEN, HIDDEN)
    p["sub_box_w3"], p["sub_box_b3"] = _init_linear(keys[5], HIDDEN, 4)
    p["obj_box_w1"], p["obj_box_b1"] = _init_linear(keys[6], HIDDEN, HIDDEN)
    p["obj_box_w2"], p["obj_box_b2"] = _init_linear(keys[7], HIDDEN, HIDDEN)
    p["obj_box_w3"], p["obj_box_b3"] = _init_linear(keys[8], HIDDEN, 4)
    p["attn_w"], p["attn_b"] = _init_linear(keys[9], HIDDEN, NUM_ATTN_CLASSES + 1)
    p["spatial_w"], p["spatial_b"] = _init_linear(keys[10], HIDDEN, NUM_SPATIAL_CLASSES)
    p["contact_w"], p["contact_b"] = _init_linear(keys[11], HIDDEN, NUM_CONTACTING_CLASSES)
    return p


def build_fused_params(p):
    """Pack ALL weights & biases into one (PACK_ROWS, 256) f32 buffer.

    Done once at init time (outside the jitted forward). Padded rows/cols are
    zero so the fused math is bit-identical to the unfused reference.
    """
    pack = jnp.zeros((PACK_ROWS, PACK_COLS), jnp.float32)
    w1r = slice(ROW_W1, ROW_W1 + HIDDEN)
    # stacked stage-1 weight: HOPD heads in lanes 0:128, interaction in 128:256
    pack = pack.at[w1r, _C_SUBH1].set(p["sub_box_w1"])
    pack = pack.at[w1r, _C_OBJH1].set(p["obj_box_w1"])
    pack = pack.at[w1r, _C_SUBCLS].set(p["sub_cls_w"])
    pack = pack.at[w1r, _C_OBJCLS].set(p["obj_cls_w"])
    pack = pack.at[w1r, _sh(_C_ATTN, 128)].set(p["attn_w"])
    pack = pack.at[w1r, _sh(_C_SPAT, 128)].set(p["spatial_w"])
    pack = pack.at[w1r, _sh(_C_CONT, 128)].set(p["contact_w"])
    # stacked stage-1 bias
    b1r = slice(ROW_B1, ROW_B1 + 1)
    pack = pack.at[b1r, _C_SUBH1].set(p["sub_box_b1"])
    pack = pack.at[b1r, _C_OBJH1].set(p["obj_box_b1"])
    pack = pack.at[b1r, _C_SUBCLS].set(p["sub_cls_b"])
    pack = pack.at[b1r, _C_OBJCLS].set(p["obj_cls_b"])
    pack = pack.at[b1r, _sh(_C_ATTN, 128)].set(p["attn_b"])
    pack = pack.at[b1r, _sh(_C_SPAT, 128)].set(p["spatial_b"])
    pack = pack.at[b1r, _sh(_C_CONT, 128)].set(p["contact_b"])
    # bbox MLP layer-2: block-diagonal, K widened to 128 (rows 64:128 stay zero)
    pack = pack.at[ROW_W2:ROW_W2 + HIDDEN, 0:HIDDEN].set(p["sub_box_w2"])
    pack = pack.at[ROW_W2 + HIDDEN:ROW_W2 + 2 * HIDDEN,
                   HIDDEN:2 * HIDDEN].set(p["obj_box_w2"])
    pack = pack.at[ROW_B2:ROW_B2 + 1, 0:HIDDEN].set(p["sub_box_b2"])
    pack = pack.at[ROW_B2:ROW_B2 + 1, HIDDEN:2 * HIDDEN].set(p["obj_box_b2"])
    # bbox MLP layer-3: boxes land at lanes 0:4 (sub) and 4:8 (obj)
    pack = pack.at[ROW_W3:ROW_W3 + HIDDEN, _C_SUBBOX].set(p["sub_box_w3"])
    pack = pack.at[ROW_W3 + HIDDEN:ROW_W3 + 2 * HIDDEN, _C_OBJBOX].set(p["obj_box_w3"])
    pack = pack.at[ROW_B3:ROW_B3 + 1, _C_SUBBOX].set(p["sub_box_b3"])
    pack = pack.at[ROW_B3:ROW_B3 + 1, _C_OBJBOX].set(p["obj_box_b3"])
    # input_proj conv: weight in cols 0:CIN, bias in col CIN
    pack = pack.at[ROW_CONV:ROW_CONV + HIDDEN, 0:CIN].set(p["proj_w"])
    pack = pack.at[ROW_CONV:ROW_CONV + HIDDEN, CIN:CIN + 1].set(p["proj_b"])
    return {"pack": pack}


# ----------------------------- full forward ----------------------------------
@jax.jit
def cdndsgg_forward(src, hopd_out, interaction_decoder_out, valid_num_list, fused_params):
    """CDNDSGG.forward with backbone/transformer outputs provided as inputs.

    src: (B, CIN, H, W) backbone feature map (NCHW)
    hopd_out: (B, Q, HIDDEN) HOPD decoder output
    interaction_decoder_out: (B, Q, HIDDEN) interaction decoder output
    """
    # TODO(synk): backbone + transformer are external modules; their outputs are inputs here.
    bsz, q, hid = hopd_out.shape
    h_sp, w_sp = src.shape[2], src.shape[3]
    n = bsz * q

    src3 = src.reshape(bsz, src.shape[1], h_sp * w_sp)       # NCHW flatten, no transpose
    x2 = jnp.concatenate([hopd_out.reshape(n, hid),
                          interaction_decoder_out.reshape(n, hid)], axis=0)

    proj_out, heads = cdndsgg_fused(src3, x2, fused_params["pack"])

    yh = heads[0:n]            # HOPD stage-1 slab (class logits)
    y3 = heads[n:2 * n]        # bbox sigmoid slab
    yi = heads[2 * n:3 * n]    # interaction slab

    out = {}
    if DSGG_TASK == "sgcls":
        out["pred_sub_logits"] = yh[:, _C_SUBCLS].reshape(bsz, q, 2)
    if not NO_UPDATE_PAIR:
        out["pred_obj_logits"] = yh[:, _C_OBJCLS].reshape(bsz, q, NUM_OBJ_CLASSES + 1)
        out["pred_sub_boxes"] = y3[:, _C_SUBBOX].reshape(bsz, q, 4)
        out["pred_obj_boxes"] = y3[:, _C_OBJBOX].reshape(bsz, q, 4)
    out["pred_attn_logits"] = yi[:, _C_ATTN].reshape(bsz, q, NUM_ATTN_CLASSES + 1)
    out["pred_spatial_logits"] = yi[:, _C_SPAT].reshape(bsz, q, NUM_SPATIAL_CLASSES)
    out["pred_contacting_logits"] = yi[:, _C_CONT].reshape(bsz, q, NUM_CONTACTING_CLASSES)
    out["valid_num_list"] = valid_num_list
    # (B, HIDDEN, H*W) -> NCHW with a pure reshape (no transpose needed)
    out["input_proj_out"] = proj_out.reshape(bsz, HIDDEN, h_sp, w_sp)
    return out


# ----------------------------- main -------------------------------------------
if __name__ == "__main__":
    key = jax.random.PRNGKey(0)
    k_src, k_hopd, k_inter, k_params = jax.random.split(key, 4)

    src = jax.random.normal(k_src, (BATCH, CIN, H, W), jnp.float32)
    hopd_out = jax.random.normal(k_hopd, (BATCH, NUM_QUERIES, HIDDEN), jnp.float32)
    interaction_out = jax.random.normal(k_inter, (BATCH, NUM_QUERIES, HIDDEN), jnp.float32)
    valid_num_list = jnp.array([NUM_QUERIES] * BATCH, jnp.int32)

    params = init_params(k_params)
    fused_params = build_fused_params(params)

    out = cdndsgg_forward(src, hopd_out, interaction_out, valid_num_list, fused_params)
    jax.block_until_ready(out)

    # ---- sanity checks against a pure-JAX reference of the module math --------
    def ref_lin(x, w, b):
        return x @ w + b

    x = hopd_out.reshape(-1, HIDDEN)
    z = interaction_out.reshape(-1, HIDDEN)
    atol = 1e-4

    ref_sub = ref_lin(x, params["sub_cls_w"], params["sub_cls_b"]).reshape(BATCH, NUM_QUERIES, 2)
    assert jnp.allclose(out["pred_sub_logits"], ref_sub, atol=atol)

    ref_obj = ref_lin(x, params["obj_cls_w"], params["obj_cls_b"]).reshape(
        BATCH, NUM_QUERIES, NUM_OBJ_CLASSES + 1)
    assert jnp.allclose(out["pred_obj_logits"], ref_obj, atol=atol)

    hs = jax.nn.relu(ref_lin(x, params["sub_box_w1"], params["sub_box_b1"]))
    hs = jax.nn.relu(ref_lin(hs, params["sub_box_w2"], params["sub_box_b2"]))
    ref_sub_boxes = jax.nn.sigmoid(
        ref_lin(hs, params["sub_box_w3"], params["sub_box_b3"])).reshape(BATCH, NUM_QUERIES, 4)
    assert jnp.allclose(out["pred_sub_boxes"], ref_sub_boxes, atol=atol)

    ho = jax.nn.relu(ref_lin(x, params["obj_box_w1"], params["obj_box_b1"]))
    ho = jax.nn.relu(ref_lin(ho, params["obj_box_w2"], params["obj_box_b2"]))
    ref_obj_boxes = jax.nn.sigmoid(
        ref_lin(ho, params["obj_box_w3"], params["obj_box_b3"])).reshape(BATCH, NUM_QUERIES, 4)
    assert jnp.allclose(out["pred_obj_boxes"], ref_obj_boxes, atol=atol)

    ref_attn = ref_lin(z, params["attn_w"], params["attn_b"]).reshape(
        BATCH, NUM_QUERIES, NUM_ATTN_CLASSES + 1)
    assert jnp.allclose(out["pred_attn_logits"], ref_attn, atol=atol)

    ref_spat = ref_lin(z, params["spatial_w"], params["spatial_b"]).reshape(
        BATCH, NUM_QUERIES, NUM_SPATIAL_CLASSES)
    assert jnp.allclose(out["pred_spatial_logits"], ref_spat, atol=atol)

    ref_cont = ref_lin(z, params["contact_w"], params["contact_b"]).reshape(
        BATCH, NUM_QUERIES, NUM_CONTACTING_CLASSES)
    assert jnp.allclose(out["pred_contacting_logits"], ref_cont, atol=atol)

    ref_proj = (jnp.einsum("oc,bchw->bohw", params["proj_w"], src)
                + params["proj_b"].reshape(1, HIDDEN, 1, 1))
    assert jnp.allclose(out["input_proj_out"], ref_proj, atol=atol)

    print("KERNEL_OK")
</pallas_src>

<mosaic_0001>
module attributes {stable_mosaic.version = 11 : i64} {
  func.func @_cdndsgg_fused_kernel(%arg0: memref<2x4x256xf32, #tpu.memory_space<vmem>>, %arg1: memref<32x32xf32, #tpu.memory_space<vmem>>, %arg2: memref<328x256xf32, #tpu.memory_space<vmem>>, %arg3: memref<2x32x256xf32, #tpu.memory_space<vmem>>, %arg4: memref<48x128xf32, #tpu.memory_space<vmem>>) attributes {dimension_semantics = [], scalar_prefetch = 0 : i64, scratch_operands = 0 : i64, tpu.core_type = #tpu.core_type<tc>} {
    %c288 = arith.constant 288 : index
    %c0 = arith.constant 0 : index
    %0 = vector.load %arg2[%c288, %c0] : memref<328x256xf32, #tpu.memory_space<vmem>>, vector<32x4xf32>
    %c288_0 = arith.constant 288 : index
    %c4 = arith.constant 4 : index
    %1 = vector.load %arg2[%c288_0, %c4] : memref<328x256xf32, #tpu.memory_space<vmem>>, vector<32x1xf32>
    %c0_1 = arith.constant 0 : index
    %c0_2 = arith.constant 0 : index
    %c0_3 = arith.constant 0 : index
    %2 = vector.load %arg0[%c0_1, %c0_2, %c0_3] : memref<2x4x256xf32, #tpu.memory_space<vmem>>, vector<1x4x256xf32>
    %3 = vector.shape_cast %2 : vector<1x4x256xf32> to vector<4x256xf32>
    %c1 = arith.constant 1 : index
    %c0_4 = arith.constant 0 : index
    %c0_5 = arith.constant 0 : index
    %4 = vector.load %arg0[%c1, %c0_4, %c0_5] : memref<2x4x256xf32, #tpu.memory_space<vmem>>, vector<1x4x256xf32>
    %5 = vector.shape_cast %4 : vector<1x4x256xf32> to vector<4x256xf32>
    %6 = tpu.concatenate %3, %5 in 1 : vector<4x256xf32>, vector<4x256xf32> -> vector<4x512xf32>
    %cst = arith.constant dense<0.000000e+00> : vector<32x512xf32>
    %7 = tpu.matmul %0, %6, %cst {dimension_numbers = #tpu.dot_dimension_numbers<[1], [0], [0], [1], [0, 0, 1, 1], [], []>} : vector<32x4xf32>, vector<4x512xf32>, vector<32x512xf32> -> vector<32x512xf32>
    %8 = vector.broadcast %1 : vector<32x1xf32> to vector<32x512xf32>
    %9 = arith.addf %7, %8 : vector<32x512xf32>
    %10 = vector.extract_strided_slice %9 {offsets = [0, 0], sizes = [32, 256], strides = [1, 1]} : vector<32x512xf32> to vector<32x256xf32>
    %c0_6 = arith.constant 0 : index
    %c0_7 = arith.constant 0 : index
    %c0_8 = arith.constant 0 : index
    %11 = vector.load %arg3[%c0_6, %c0_7, %c0_8] : memref<2x32x256xf32, #tpu.memory_space<vmem>>, vector<1x32x256xf32>
    %12 = vector.shape_cast %11 : vector<1x32x256xf32> to vector<32x256xf32>
    %13 = vector.shape_cast %10 : vector<32x256xf32> to vector<1x32x256xf32>
    tpu.vector_store %arg3[%c0_6, %c0_7, %c0_8], %13 {strides = array<i32>} : memref<2x32x256xf32, #tpu.memory_space<vmem>>, vector<1x32x256xf32>,
    %14 = vector.extract_strided_slice %9 {offsets = [0, 256], sizes = [32, 256], strides = [1, 1]} : vector<32x512xf32> to vector<32x256xf32>
    %c1_9 = arith.constant 1 : index
    %c0_10 = arith.constant 0 : index
    %c0_11 = arith.constant 0 : index
    %15 = vector.load %arg3[%c1_9, %c0_10, %c0_11] : memref<2x32x256xf32, #tpu.memory_space<vmem>>, vector<1x32x256xf32>
    %16 = vector.shape_cast %15 : vector<1x32x256xf32> to vector<32x256xf32>
    %17 = vector.shape_cast %14 : vector<32x256xf32> to vector<1x32x256xf32>
    tpu.vector_store %arg3[%c1_9, %c0_10, %c0_11], %17 {strides = array<i32>} : memref<2x32x256xf32, #tpu.memory_space<vmem>>, vector<1x32x256xf32>,
    %c0_12 = arith.constant 0 : index
    %c0_13 = arith.constant 0 : index
    %18 = vector.load %arg1[%c0_12, %c0_13] : memref<32x32xf32, #tpu.memory_space<vmem>>, vector<32x32xf32>
    %c0_14 = arith.constant 0 : index
    %c0_15 = arith.constant 0 : index
    %19 = vector.load %arg2[%c0_14, %c0_15] : memref<328x256xf32, #tpu.memory_space<vmem>>, vector<32x256xf32>
    %c320 = arith.constant 320 : index
    %c0_16 = arith.constant 0 : index
    %20 = vector.load %arg2[%c320, %c0_16] : memref<328x256xf32, #tpu.memory_space<vmem>>, vector<1x256xf32>
    %cst_17 = arith.constant dense<0.000000e+00> : vector<32x256xf32>
    %21 = tpu.matmul %18, %19, %cst_17 {dimension_numbers = #tpu.dot_dimension_numbers<[1], [0], [0], [1], [0, 0, 1, 1], [], []>} : vector<32x32xf32>, vector<32x256xf32>, vector<32x256xf32> -> vector<32x256xf32>
    %22 = vector.broadcast %20 : vector<1x256xf32> to vector<32x256xf32>
    %23 = arith.addf %21, %22 : vector<32x256xf32>
    %24 = vector.extract_strided_slice %23 {offsets = [0, 0], sizes = [16, 128], strides = [1, 1]} : vector<32x256xf32> to vector<16x128xf32>
    %25 = vector.extract_strided_slice %23 {offsets = [16, 128], sizes = [16, 128], strides = [1, 1]} : vector<32x256xf32> to vector<16x128xf32>
    %c32 = arith.constant 32 : index
    %c0_18 = arith.constant 0 : index
    %26 = vector.load %arg2[%c32, %c0_18] : memref<328x256xf32, #tpu.memory_space<vmem>>, vector<128x128xf32>
    %c321 = arith.constant 321 : index
    %c0_19 = arith.constant 0 : index
    %27 = vector.load %arg2[%c321, %c0_19] : memref<328x256xf32, #tpu.memory_space<vmem>>, vector<1x128xf32>
    %cst_20 = arith.constant 0.000000e+00 : f32
    %28 = vector.broadcast %cst_20 : f32 to vector<16x128xf32>
    %29 = arith.maximumf %24, %28 : vector<16x128xf32>
    %cst_21 = arith.constant dense<0.000000e+00> : vector<16x128xf32>
    %30 = tpu.matmul %29, %26, %cst_21 {dimension_numbers = #tpu.dot_dimension_numbers<[1], [0], [0], [1], [0, 0, 1, 1], [], []>} : vector<16x128xf32>, vector<128x128xf32>, vector<16x128xf32> -> vector<16x128xf32>
    %31 = vector.broadcast %27 : vector<1x128xf32> to vector<16x128xf32>
    %32 = arith.addf %30, %31 : vector<16x128xf32>
    %cst_22 = arith.constant 0.000000e+00 : f32
    %33 = vector.broadcast %cst_22 : f32 to vector<16x128xf32>
    %34 = arith.maximumf %32, %33 : vector<16x128xf32>
    %c160 = arith.constant 160 : index
    %c0_23 = arith.constant 0 : index
    %35 = vector.load %arg2[%c160, %c0_23] : memref<328x256xf32, #tpu.memory_space<vmem>>, vector<128x128xf32>
    %c322 = arith.constant 322 : index
    %c0_24 = arith.constant 0 : index
    %36 = vector.load %arg2[%c322, %c0_24] : memref<328x256xf32, #tpu.memory_space<vmem>>, vector<1x128xf32>
    %cst_25 = arith.constant dense<0.000000e+00> : vector<16x128xf32>
    %37 = tpu.matmul %34, %35, %cst_25 {dimension_numbers = #tpu.dot_dimension_numbers<[1], [0], [0], [1], [0, 0, 1, 1], [], []>} : vector<16x128xf32>, vector<128x128xf32>, vector<16x128xf32> -> vector<16x128xf32>
    %38 = vector.broadcast %36 : vector<1x128xf32> to vector<16x128xf32>
    %39 = arith.addf %37, %38 : vector<16x128xf32>
    %40 = arith.negf %39 : vector<16x128xf32>
    %41 = math.exp %40 : vector<16x128xf32>
    %cst_26 = arith.constant 1.000000e+00 : f32
    %42 = vector.broadcast %cst_26 : f32 to vector<16x128xf32>
    %43 = arith.addf %42, %41 : vector<16x128xf32>
    %44 = arith.divf %42, %43 : vector<16x128xf32>
    %c0_27 = arith.constant 0 : index
    %c0_28 = arith.constant 0 : index
    %45 = vector.load %arg4[%c0_27, %c0_28] : memref<48x128xf32, #tpu.memory_space<vmem>>, vector<16x128xf32>
    tpu.vector_store %arg4[%c0_27, %c0_28], %24 {strides = array<i32>} : memref<48x128xf32, #tpu.memory_space<vmem>>, vector<16x128xf32>,
    %c16 = arith.constant 16 : index
    %c0_29 = arith.constant 0 : index
    %46 = vector.load %arg4[%c16, %c0_29] : memref<48x128xf32, #tpu.memory_space<vmem>>, vector<16x128xf32>
    tpu.vector_store %arg4[%c16, %c0_29], %44 {strides = array<i32>} : memref<48x128xf32, #tpu.memory_space<vmem>>, vector<16x128xf32>,
    %c32_30 = arith.constant 32 : index
    %c0_31 = arith.constant 0 : index
    %47 = vector.load %arg4[%c32_30, %c0_31] : memref<48x128xf32, #tpu.memory_space<vmem>>, vector<16x128xf32>
    tpu.vector_store %arg4[%c32_30, %c0_31], %25 {strides = array<i32>} : memref<48x128xf32, #tpu.memory_space<vmem>>, vector<16x128xf32>,
    return
  }
}

</mosaic_0001>

<bundles_post_ra>
// kernel: cdndsgg_forward.1
= control target key start
LH: loop header
LB: loop body
LE: loop exit
PB: predicated region body
PF: predicated region fallthrough
CT: control target
= control target key end

     0   :  { %10 = vsyncpa [#allocation3], 0  ;;  %s522_s18 = smov [#allocation2]   ;;  %s523_s20 = smov 256   ;;  %s732_s0 = inlined_call_operand.vmem [shape: f32[2,4,256], index: 0, kind: input, shape index: {}]   ;;  %s733_s1 = inlined_call_operand.vmem [shape: f32[32,32], index: 1, kind: input, shape index: {}]   ;;  %s734_s2 = inlined_call_operand.hbm [shape: f32[328,256], index: 2, kind: input, shape index: {}]   ;;  %s735_s3 = inlined_call_operand.vmem [shape: f32[2,32,256], index: 3, kind: output, shape index: {0}]   ;;  %s736_s4 = inlined_call_operand.vmem [shape: f32[48,128], index: 4, kind: output, shape index: {1}]  }
   0x1   :  { %s19_s17 = sshll.u32 %s734_s2, 4  ;;  %s21_s19 = sshll.u32 %s522_s18, 4  ;;  %s20_s17 = int_to_ptr.hbm [resolvable:$true] %s19_s17  ;;  %s22_s19 = int_to_ptr.vmem [resolvable:$true] %s21_s19 }
   0x2   :  { %s524_s21 = smov 16  }
   0x3   :  { %27 = dma.hbm_to_vmem [thread:$0]  %s20_s17, 10496, %s22_s19, [#allocation3], %s523_s20, %s523_s20, %s524_s21  }
   0x4   :  { %520 = dma.done.wait [#allocation3], 10496  }
   0x5   :  { %521 = vsyncadd [#allocation3], 4294956800  ;;  %v525_v0 = vmov 4   ;;  %v36_v1 = vld [vmem:[%s732_s0] sm:$0xff]  ;;  %v557_v2 = vld [vmem:[#allocation2 + $0x240] sm:$0xff]  ;;  %vm76_vm0 = vcmask 1043456  }
   0x6   :  { %486 = vset.pattern.permute.xlu0 %v525_v0  ;;  %487 = vset.pattern.permute.xlu1 %v525_v0  ;;  %40 = vst [vmem:[#allocation1] ss:$2 sm:$0xff] %v36_v1  ;;  %v560_v3 = vld [vmem:[#allocation2 + $0x260] sm:$0xff]  ;;  %vm67_vm1 = vcmask 31744   ;;  %v228_v5 = vld [vmem:[#allocation2 + $0x30] sm:$0xff]  ;;  %v598_v16 = vld [vmem:[%s733_s1] sm:$0xff] }
   0x7   :  { %49 = vperm.xlu0 %486, %v557_v2   ;;  %59 = vperm.xlu1 %487, %v560_v3   ;;  %v441_v4 = vld [vmem:[%s732_s0 + $0x8] sm:$0xff]  ;;  %v566_v6 = vld [vmem:[#allocation2 + $0x250] sm:$0xff]  ;;  %vm237_vm2 = vcmask 261120   ;;  %v229_v47 = vld [vmem:[#allocation2 + $0x38] sm:$0xff] }
   0x8   :  { %v226_v9 = vld [vmem:[#allocation2 + $0x20] sm:$0xff]  ;;  %v573_v10 = vld [vmem:[#allocation2 + $0x270] sm:$0xff] }
   0x9   :  { %v224_v11 = vld [vmem:[#allocation2 + $0x10] sm:$0xff]  ;;  %v222_v12 = vld [vmem:[#allocation2] sm:$0xff] }
   0xa   :  { %v319_v13 = vld [vmem:[#allocation2 + $0x130] sm:$0xff]  ;;  %v318_v15 = vld [vmem:[#allocation2 + $0x120] sm:$0xff] }
   0xb   :  { %v609_v17 = vld [vmem:[%s733_s1 + $0x8] sm:$0xff]  ;;  %v317_v18 = vld [vmem:[#allocation2 + $0x110] sm:$0xff] }
   0xc   :  { %v316_v19 = vld [vmem:[#allocation2 + $0x100] sm:$0xff]  ;;  %v315_v20 = vld [vmem:[#allocation2 + $0xf0] sm:$0xff] }
   0xd   :  { %v41_v7 = vld.sshfl [vmem:[#allocation1] sm:$0xff pattern:$0x75316420]  ;;  %v42_v8 = vld.sshfl [vmem:[#allocation1 + $0x8] sm:$0xff pattern:$0x75316420] }
   0xe   :  { %44 = vst [vmem:[#allocation1] ss:$2 sm:$0xff] %v441_v4  ;;  %442 = vmatpush.msk.msra.mxu0 %vm76_vm0, %v41_v7  ;;  %480 = vmatpush.msk.msra.mxu2 %vm76_vm0, %v41_v7  ;;  %v314_v21 = vld [vmem:[#allocation2 + $0xe0] sm:$0xff]  ;;  %v313_v22 = vld [vmem:[#allocation2 + $0xd0] sm:$0xff] }
   0xf   :  { %54 = vperm.xlu0 %486, %v566_v6   ;;  %443 = vmatmul.msk.f32.vlgmr.msra.gmra.mxu0 %vm67_vm1, %v557_v2  ;;  %v312_v23 = vld [vmem:[#allocation2 + $0xc0] sm:$0xff]  ;;  %v311_v24 = vld [vmem:[#allocation2 + $0xb0] sm:$0xff] }
  0x10   :  { %262 = vmatpush.msrb.mxu0 %v228_v5  ;;  %446 = vmatmul.msk.f32.vlgmr.msra.gmra.mxu2 %vm67_vm1, %v573_v10  ;;  %v310_v25 = vld [vmem:[#allocation2 + $0xa0] sm:$0xff]  ;;  %v309_v26 = vld [vmem:[#allocation2 + $0x90] sm:$0xff] }
  0x11   :  { %64 = vperm.xlu1 %487, %v573_v10   ;;  %481 = vmatpush.msk.msra.mxu3 %vm76_vm0, %v42_v8  ;;  %v308_v27 = vld [vmem:[#allocation2 + $0x80] sm:$0xff]  ;;  %v307_v28 = vld [vmem:[#allocation2 + $0x70] sm:$0xff] }
  0x12   :  { %263 = vmatpush.msrb.mxu0 %v226_v9  ;;  %451 = vmatmul.msk.f32.vlgmr.msra.gmra.mxu3 %vm67_vm1, %v573_v10  ;;  %v306_v29 = vld [vmem:[#allocation2 + $0x60] sm:$0xff]  ;;  %v305_v30 = vld [vmem:[#allocation2 + $0x50] sm:$0xff] }
  0x13   :  { %447 = vmatpush.msk.msra.mxu1 %vm76_vm0, %v42_v8  ;;  %v304_v31 = vld [vmem:[#allocation2 + $0x40] sm:$0xff]  ;;  %v363_v38 = vld [vmem:[#allocation2 + $0x230] sm:$0xff] }
  0x14   :  { %264 = vmatpush.msrb.mxu0 %v224_v11  ;;  %448 = vmatmul.msk.f32.vlgmr.msra.gmra.mxu1 %vm67_vm1, %v557_v2  ;;  %v362_v41 = vld [vmem:[#allocation2 + $0x220] sm:$0xff]  ;;  %v361_v45 = vld [vmem:[#allocation2 + $0x210] sm:$0xff] }
  0x15   :  { %v45_v14 = vld.sshfl [vmem:[#allocation1] sm:$0xff pattern:$0x75316420]  ;;  %v46_v37 = vld.sshfl [vmem:[#allocation1 + $0x8] sm:$0xff pattern:$0x75316420]  ;;  %289 = vmatpush.msrb.mxu1 %v229_v47 }
  0x16   :  { %265 = vmatpush.msrb.mxu0 %v222_v12  ;;  %452 = vmatpush.msk.msrb.mxu2 %vm76_vm0, %v45_v14  ;;  %v360_v46 = vld [vmem:[#allocation2 + $0x200] sm:$0xff]  ;;  %v359_v48 = vld [vmem:[#allocation2 + $0x1f0] sm:$0xff]  ;;  %v227_v14 = vld [vmem:[#allocation2 + $0x28] sm:$0xff] }
  0x17   :  { %444 = vmatmul.msk.f32.gmra.mxu0 %vm67_vm1, %v566_v6  ;;  %457 = vmatpush.msk.msrb.mxu3 %vm76_vm0, %v46_v37  ;;  %v358_v50 = vld [vmem:[#allocation2 + $0x1e0] sm:$0xff]  ;;  %v357_v54 = vld [vmem:[#allocation2 + $0x1d0] sm:$0xff] }
  0x18   :  { %323 = vmatpush.msra.mxu2 %v319_v13  ;;  %v642_v55 = vld [vmem:[#allocation2 + $0x280] ss:$8 sm:$0x3]  ;;  %v355_v58 = vld [vmem:[#allocation2 + $0x1b0] sm:$0xff]  ;;  %290 = vmatpush.msrb.mxu1 %v227_v14 }
  0x19   :  { %453 = vmatmul.msk.f32.vlgmr.msrb.gmra.mxu2 %vm67_vm1, %v557_v2  ;;  %365 = vmatpush.msra.mxu3 %v363_v38  ;;  %v356_v56 = vld [vmem:[#allocation2 + $0x1c0] sm:$0xff]  ;;  %v233_v57 = vperm.slane %v642_v55, 0  ;;  %v353_v0 = vld [vmem:[#allocation2 + $0x190] sm:$0xff] }
  0x1a   :  { %324 = vmatpush.msra.mxu2 %v318_v15  ;;  %458 = vmatmul.msk.f32.vlgmr.msrb.gmra.mxu3 %vm67_vm1, %v557_v2  ;;  %v354_v60 = vld [vmem:[#allocation2 + $0x1a0] sm:$0xff]  ;;  %v349_v12 = vld [vmem:[#allocation2 + $0x150] sm:$0xff]  ;;  %v225_v15 = vld [vmem:[#allocation2 + $0x18] sm:$0xff] }
  0x1b   :  { %366 = vmatpush.msra.mxu3 %v362_v41  ;;  %v352_v2 = vld [vmem:[#allocation2 + $0x180] sm:$0xff]  ;;  %291 = vmatpush.msrb.mxu1 %v225_v15 }
  0x1c   :  { %449 = vmatmul.msk.f32.gmra.mxu1 %vm67_vm1, %v566_v6  ;;  %325 = vmatpush.msra.mxu2 %v317_v18  ;;  %v350_v5 = vld [vmem:[#allocation2 + $0x160] sm:$0xff]  ;;  %v223_v18 = vld [vmem:[#allocation2 + $0x8] sm:$0xff] }
  0x1d   :  { %367 = vmatpush.msra.mxu3 %v361_v45  ;;  %v348_v13 = vld [vmem:[#allocation2 + $0x140] sm:$0xff]  ;;  %292 = vmatpush.msrb.mxu1 %v223_v18 }
  0x1e   :  { %326 = vmatpush.msra.mxu2 %v316_v19  ;;  %v220_v19 = vld [vmem:[%s733_s1 + $0x10] sm:$0xff] }
  0x1f   :  { %445 = vmatmul.msk.f32.gmra.mxu0 %vm67_vm1, %v560_v3  ;;  %368 = vmatpush.msra.mxu3 %v360_v46 }
  0x20   :  { %327 = vmatpush.msra.mxu2 %v315_v20 }
  0x21   :  { %454 = vmatmul.msk.f32.gmra.mxu2 %vm67_vm1, %v566_v6  ;;  %369 = vmatpush.msra.mxu3 %v359_v48  ;;  %v234_v48 = vperm.slane %v642_v55, 1 }
  0x22   :  { %328 = vmatpush.msra.mxu2 %v314_v21  ;;  %459 = vmatmul.msk.f32.gmra.mxu3 %vm67_vm1, %v566_v6 }
  0x23   :  { %370 = vmatpush.msra.mxu3 %v358_v50 }
  0x24   :  { %450 = vmatmul.msk.f32.gmra.mxu1 %vm67_vm1, %v560_v3  ;;  %329 = vmatpush.msra.mxu2 %v313_v22 }
  0x25   :  { %371 = vmatpush.msra.mxu3 %v357_v54 }
  0x26   :  { %330 = vmatpush.msra.mxu2 %v312_v23 }
  0x27   :  { %470 = vmatmul.msk.f32.vlgmr.msrb.gmra.mxu0 %vm237_vm2, %v598_v16  ;;  %372 = vmatpush.msra.mxu3 %v356_v56 }
  0x28   :  { %331 = vmatpush.msra.mxu2 %v311_v24  ;;  %v221_v24 = vld [vmem:[%s733_s1 + $0x18] sm:$0xff] }
  0x29   :  { %455 = vmatmul.msk.f32.gmra.mxu2 %vm67_vm1, %v560_v3  ;;  %373 = vmatpush.msra.mxu3 %v355_v58 }
  0x2a   :  { %332 = vmatpush.msra.mxu2 %v310_v25  ;;  %460 = vmatmul.msk.f32.gmra.mxu3 %vm67_vm1, %v560_v3  ;;  %v351_v3 = vld [vmem:[#allocation2 + $0x170] sm:$0xff] }
  0x2b   :  { %374 = vmatpush.msra.mxu3 %v354_v60 }
  0x2c   :  { %333 = vmatpush.msra.mxu2 %v309_v26  ;;  %474 = vmatmul.msk.f32.vlgmr.msrb.gmra.mxu1 %vm237_vm2, %v598_v16 }
  0x2d   :  { %375 = vmatpush.msra.mxu3 %v353_v0 }
  0x2e   :  { %334 = vmatpush.msra.mxu2 %v308_v27 }
  0x2f   :  { %471 = vmatmul.msk.f32.gmra.mxu0 %vm237_vm2, %v609_v17  ;;  %376 = vmatpush.msra.mxu3 %v352_v2 }
  0x30   :  { %335 = vmatpush.msra.mxu2 %v307_v28 }
  0x31   :  { %456 = vmatmul.msk.f32.gmra.mxu2 %vm67_vm1, %v573_v10  ;;  %377 = vmatpush.msra.mxu3 %v351_v3 }
  0x32   :  { %336 = vmatpush.msra.mxu2 %v306_v29  ;;  %461 = vmatmul.msk.f32.gmra.mxu3 %vm67_vm1, %v573_v10  ;;  %v320_v29 = vld [vmem:[#allocation2 + $0x281] ss:$0 sm:$0xff] }
  0x33   :  { %378 = vmatpush.msra.mxu3 %v350_v5 }
  0x34   :  { %337 = vmatpush.msra.mxu2 %v305_v30  ;;  %475 = vmatmul.msk.f32.gmra.mxu1 %vm237_vm2, %v609_v17 }
  0x35   :  { %379 = vmatpush.msra.mxu3 %v349_v12 }
  0x36   :  { %338 = vmatpush.msra.mxu2 %v304_v31 }
  0x37   :  { %380 = vmatpush.msra.mxu3 %v348_v13  ;;  %472 = vmatmul.msk.f32.gmra.mxu0 %vm237_vm2, %v220_v19 }
  0x3c   :  { %476 = vmatmul.msk.f32.gmra.mxu1 %vm237_vm2, %v220_v19 }
  0x3f   :  { %473 = vmatmul.msk.f32.gmra.mxu0 %vm237_vm2, %v221_v24 }
  0x44   :  { %477 = vmatmul.msk.f32.gmra.mxu1 %vm237_vm2, %v221_v24 }
  0x79   :  { %v615_v32 = vpop.permute.xlu0 %49  ;;  %v617_v33 = vpop.permute.xlu1 %59 }
  0x81   :  { %v625_v39 = vpop.permute.xlu0 %54 }
  0x83   :  { %v623_v36 = vpop.permute.xlu1 %64 }
  0x8c   :  { %v102_v34 = vpop.f32.mrf.mxu0 }
  0x8d   :  { %v103_v35 = vadd.f32 %v102_v34, %v615_v32 }
  0x8f   :  { %201 = vst [vmem:[%s735_s3] sm:$0xff] %v103_v35 }
  0x91   :  { %v131_v21 = vpop.f32.mrf.mxu1 }
  0x92   :  { %v132_v23 = vadd.f32 %v131_v21, %v615_v32 }
  0x93   :  { %v111_v40 = vpop.f32.mrf.mxu2 }
  0x94   :  { %v105_v42 = vpop.f32.mrf.mxu0  ;;  %v112_v43 = vadd.f32 %v111_v40, %v623_v36  ;;  %202 = vst [vmem:[%s735_s3 + $0x8] sm:$0xff] %v132_v23 }
  0x95   :  { %v106_v44 = vadd.f32 %v105_v42, %v625_v39  ;;  %v140_v20 = vpop.f32.mrf.mxu3 }
  0x96   :  { %207 = vst [vmem:[%s735_s3 + $0x30] sm:$0xff] %v112_v43  ;;  %v141_v22 = vadd.f32 %v140_v20, %v623_v36 }
  0x97   :  { %203 = vst [vmem:[%s735_s3 + $0x10] sm:$0xff] %v106_v44 }
  0x98   :  { %208 = vst [vmem:[%s735_s3 + $0x38] sm:$0xff] %v141_v22 }
  0x99   :  { %v134_v26 = vpop.f32.mrf.mxu1 }
  0x9a   :  { %v135_v16 = vadd.f32 %v134_v26, %v625_v39 }
  0x9c   :  { %v160_v49 = vpop.f32.mrf.mxu2  ;;  %v108_v51 = vpop.f32.mrf.mxu0  ;;  %204 = vst [vmem:[%s735_s3 + $0x18] sm:$0xff] %v135_v16 }
  0x9d   :  { %v161_v52 = vadd.f32 %v160_v49, %v615_v32  ;;  %v109_v53 = vadd.f32 %v108_v51, %v617_v33  ;;  %v189_v25 = vpop.f32.mrf.mxu3 }
  0x9e   :  { %v190_v27 = vadd.f32 %v189_v25, %v615_v32 }
  0x9f   :  { %462 = vst [vmem:[%s735_s3 + $0x40] sm:$0xff] %v161_v52 }
  0xa0   :  { %205 = vst [vmem:[%s735_s3 + $0x20] sm:$0xff] %v109_v53 }
  0xa1   :  { %463 = vst [vmem:[%s735_s3 + $0x48] sm:$0xff] %v190_v27  ;;  %v137_v43 = vpop.f32.mrf.mxu1 }
  0xa2   :  { %v138_v44 = vadd.f32 %v137_v43, %v617_v33 }
  0xa4   :  { %v163_v59 = vpop.f32.mrf.mxu2  ;;  %v267_v61 = vpop.f32.mrf.mxu0  ;;  %206 = vst [vmem:[%s735_s3 + $0x28] sm:$0xff] %v138_v44 }
  0xa5   :  { %v164_v62 = vadd.f32 %v163_v59, %v625_v39  ;;  %v268_v63 = vadd.f32 %v267_v61, %v233_v57  ;;  %v192_v28 = vpop.f32.mrf.mxu3 }
  0xa6   :  { %v193_v30 = vadd.f32 %v192_v28, %v625_v39 }
  0xa7   :  { %464 = vst [vmem:[%s735_s3 + $0x50] sm:$0xff] %v164_v62  ;;  %v321_v1 = vmax.f32 %v268_v63, 0.0 }
  0xa8   :  { %426 = vst [vmem:[%s736_s4] sm:$0xff] %v268_v63 }
  0xa9   :  { %339 = vmatmul.f32.vlgmr.msra.gmra.mxu2 %v321_v1  ;;  %465 = vst [vmem:[%s735_s3 + $0x58] sm:$0xff] %v193_v30  ;;  %v294_v46 = vpop.f32.mrf.mxu1 }
  0xac   :  { %v166_v4 = vpop.f32.mrf.mxu2  ;;  %v270_v6 = vpop.f32.mrf.mxu0 }
  0xad   :  { %v167_v7 = vadd.f32 %v166_v4, %v617_v33  ;;  %v271_v8 = vadd.f32 %v270_v6, %v233_v57  ;;  %v195_v34 = vpop.f32.mrf.mxu3 }
  0xae   :  { %v196_v35 = vadd.f32 %v195_v34, %v617_v33 }
  0xaf   :  { %466 = vst [vmem:[%s735_s3 + $0x60] sm:$0xff] %v167_v7  ;;  %v322_v9 = vmax.f32 %v271_v8, 0.0 }
  0xb0   :  { %427 = vst [vmem:[%s736_s4 + $0x8] sm:$0xff] %v271_v8 }
  0xb1   :  { %342 = vmatmul.f32.gmra.mxu2 %v322_v9  ;;  %467 = vst [vmem:[%s735_s3 + $0x68] sm:$0xff] %v196_v35  ;;  %v296_v47 = vpop.f32.mrf.mxu1 }
  0xb4   :  { %v169_v11 = vpop.f32.mrf.mxu2  ;;  %v273_v42 = vpop.f32.mrf.mxu0 }
  0xb5   :  { %v170_v10 = vadd.f32 %v169_v11, %v623_v36  ;;  %v198_v40 = vpop.f32.mrf.mxu3 }
  0xb6   :  { %v199_v41 = vadd.f32 %v198_v40, %v623_v36  ;;  %v364_v36 = vld [vmem:[#allocation2 + $0x282] ss:$0 sm:$0xff] }
  0xb7   :  { %468 = vst [vmem:[%s735_s3 + $0x70] sm:$0xff] %v170_v10 }
  0xb8   :  { %469 = vst [vmem:[%s735_s3 + $0x78] sm:$0xff] %v199_v41 }
  0xb9   :  { %v298_v49 = vpop.f32.mrf.mxu1 }
  0xba   :  { %v299_v50 = vadd.f32 %v298_v49, %v234_v48 }
  0xbc   :  { %v275_v45 = vpop.f32.mrf.mxu0  ;;  %430 = vst [vmem:[%s736_s4 + $0x20] sm:$0xff] %v299_v50 }
  0xc1   :  { %v301_v33 = vpop.f32.mrf.mxu1 }
  0xc2   :  { %v302_v54 = vadd.f32 %v301_v33, %v234_v48 }
  0xc4   :  { %431 = vst [vmem:[%s736_s4 + $0x28] sm:$0xff] %v302_v54 }
 0x12c   :  { %v340_v31 = vpop.f32.mrf.mxu2 }
 0x12d   :  { %v341_v17 = vadd.f32 %v340_v31, %v320_v29 }
 0x12f   :  { %v346_v32 = vmax.f32 %v341_v17, 0.0 }
 0x131   :  { %381 = vmatmul.f32.vlgmr.msra.gmra.mxu3 %v346_v32 }
 0x134   :  { %v343_v37 = vpop.f32.mrf.mxu2 }
 0x135   :  { %v344_v38 = vadd.f32 %v343_v37, %v320_v29 }
 0x137   :  { %v347_v39 = vmax.f32 %v344_v38, 0.0 }
 0x139   :  { %384 = vmatmul.f32.gmra.mxu3 %v347_v39 }
 0x1b4   :  { %v382_v51 = vpop.f32.mrf.mxu3 }
 0x1b5   :  { %v383_v52 = vadd.f32 %v382_v51, %v364_v36 }
 0x1b7   :  { %v478_v53 = vmul.f32 -1.442695, %v383_v52 }
 0x1b9   :  { %488 = vpow2.f32 %v478_v53 }
 0x1bc   :  { %v385_v56 = vpop.f32.mrf.mxu3 }
 0x1bd   :  { %v386_v57 = vadd.f32 %v385_v56, %v364_v36 }
 0x1bf   :  { %v489_v55 = vpop.eup %488  ;;  %v479_v58 = vmul.f32 -1.442695, %v386_v57 }
 0x1c0   :  { %v394_v59 = vadd.f32 1.0, %v489_v55 }
 0x1c1   :  { %490 = vpow2.f32 %v479_v58 }
 0x1c2   :  { %492 = vrcp.f32 %v394_v59  ;;  %v407_v1 = vand.u32 2147483648, %v394_v59  ;;  %v405_v3 = vand.u32 2147483647, %v394_v59  ;;  %vm401_vm4 = vweird.f32 %v394_v59 }
 0x1c4   :  { %v408_v6 = vor.u32 1.1754944e-38, %v407_v1  ;;  %vm406_vm6 = vcmp.eq.f32.partialorder %v405_v3, 8.507059e+37 }
 0x1c7   :  { %v491_v60 = vpop.eup %490 }
 0x1c8   :  { %v493_v61 = vpop.eup %492  ;;  %v395_v62 = vadd.f32 1.0, %v491_v60 }
 0x1c9   :  { %v397_v63 = vmul.f32 %v493_v61, %v394_v59  ;;  %vm402_vm3 = vweird.f32 %v493_v61 }
 0x1ca   :  { %494 = vrcp.f32 %v395_v62  ;;  %vm403_vm5 = vmor %vm401_vm4, %vm402_vm3  ;;  %v422_v10 = vand.u32 2147483648, %v395_v62  ;;  %v420_v13 = vand.u32 2147483647, %v395_v62  ;;  %vm416_vm8 = vweird.f32 %v395_v62 }
 0x1cb   :  { %v398_v0 = vsub.f32 1.0, %v397_v63 }
 0x1cc   :  { %v423_v15 = vor.u32 1.1754944e-38, %v422_v10  ;;  %vm421_vm10 = vcmp.eq.f32.partialorder %v420_v13, 8.507059e+37 }
 0x1cd   :  { %v399_v2 = vmul.f32 %v493_v61, %v398_v0 }
 0x1cf   :  { %v400_v4 = vadd.f32 %v493_v61, %v399_v2 }
 0x1d0   :  { %v495_v5 = vpop.eup %494 }
 0x1d1   :  { %v404_v7 = vsel %vm403_vm5, %v493_v61, %v400_v4  ;;  %v412_v8 = vmul.f32 %v495_v5, %v395_v62  ;;  %vm417_vm7 = vweird.f32 %v495_v5 }
 0x1d2   :  { %v409_v9 = vsel %vm406_vm6, %v408_v6, %v404_v7  ;;  %vm418_vm9 = vmor %vm416_vm8, %vm417_vm7 }
 0x1d3   :  { %428 = vst [vmem:[%s736_s4 + $0x10] sm:$0xff] %v409_v9  ;;  %v413_v11 = vsub.f32 1.0, %v412_v8 }
 0x1d5   :  { %v414_v12 = vmul.f32 %v495_v5, %v413_v11 }
 0x1d7   :  { %v415_v14 = vadd.f32 %v495_v5, %v414_v12 }
 0x1d9   :  { %v419_v18 = vsel %vm418_vm9, %v495_v5, %v415_v14 }
 0x1da   :  { %v424_v19 = vsel %vm421_vm10, %v423_v15, %v419_v18 }
 0x1db   :  { %429 = vst [vmem:[%s736_s4 + $0x18] sm:$0xff] %v424_v19 }
 0x1dc   :  { %440 = vsyncpa [#allocation3], 1 }

</bundles_post_ra>
